<compile_context>
chip_gen: v7x
topology: tpu7x:2x2x1
jax: 0.10.0
libtpu: 0.0.40
codegen_flags: <defaults>
</compile_context>

<pallas_src>
import functools

import jax
import jax.numpy as jnp
from jax.experimental import pallas as pl
from jax.experimental.pallas import tpu as pltpu

IN_DIM = 1024
HID_DIM = 512
LANE = 128


def _round_up(x, m):
    return ((x + m - 1) // m) * m


def _mlp_head_kernel(x_ref, w1_ref, w2_ref, o_ref):
    # x_ref:  (tm, 1024)  VMEM, caller dtype (usually f32)
    # w1_ref: (1024, 512) VMEM, bf16 (fc_1.weight pre-transposed)
    # w2_ref: (512, Cp)   VMEM, bf16 (fc_2.weight pre-transposed, lane-padded)
    # o_ref:  (tm, Cp)    VMEM, caller dtype
    x = x_ref[...].astype(w1_ref.dtype)                      # bf16 feed for the MXU
    h = jnp.dot(x, w1_ref[...], preferred_element_type=jnp.float32)
    h = jnp.maximum(h, 0.0)                                  # ReLU on the f32 accumulator
    out = jnp.dot(h.astype(w2_ref.dtype), w2_ref[...],
                  preferred_element_type=jnp.float32)
    o_ref[...] = out.astype(o_ref.dtype)


def prepare_ano_head_params(w1, w2, compute_dtype=jnp.bfloat16):
    """One-time parameter prep (call at init, NOT per forward call).

    w1: [512, 1024] = fc_1.weight, w2: [C, 512] = fc_2.weight.
    Returns (w1_t, w2_t): [1024, 512] and [512, Cp], Cp = round_up(C, 128)
    (zero-padded lanes), both cast to `compute_dtype` for the MXU.  Hoisting
    the transpose/cast/pad here removes the per-call 2 MiB W1 transpose copy.
    """
    C = w2.shape[0]
    Cp = _round_up(max(C, LANE), LANE)
    w1_t = w1.T.astype(compute_dtype)                        # (1024, 512)
    w2_t = w2.T.astype(compute_dtype)                        # (512, C)
    if Cp != C:
        w2_t = jnp.pad(w2_t, ((0, 0), (0, Cp - C)))          # lane-dense output stores
    return w1_t, w2_t


def _choose_tm(M, tile_m):
    if M < 2 * 256:
        return M  # one full block; tiny M is weight-DMA bound anyway
    # >= 2 grid steps so both v7x TensorCores get work under ("parallel",);
    # multiples of 256 keep the 2x256^2 MXU (v6e/v7x) full-width and are also
    # multiples of v5e's 128.
    return max(256, min(tile_m, _round_up(pl.cdiv(M, 2), 256)))


@functools.partial(jax.jit, static_argnames=("ano_classes", "tile_m"))
def ano_classification_head(x, w1_t, w2_t, *, ano_classes, tile_m=512):
    """x: [..., 1024]; w1_t/w2_t from prepare_ano_head_params()."""
    orig_shape = x.shape
    assert orig_shape[-1] == IN_DIM
    x2 = x.reshape(-1, IN_DIM)
    M = x2.shape[0]
    Cp = w2_t.shape[1]

    tm = _choose_tm(M, tile_m)
    grid = (pl.cdiv(M, tm),)

    # VMEM budget: double-buffered x/out tiles, weights (fetched once — Pallas
    # skips the refetch for an unchanged block index — but account 2x for the
    # pipeline's buffer reservation; only ~1 MiB at bf16), plus f32 temps.
    x_bytes = 2 * tm * IN_DIM * x2.dtype.itemsize
    w_bytes = 2 * (IN_DIM * HID_DIM + HID_DIM * Cp) * w1_t.dtype.itemsize
    out_bytes = 2 * tm * Cp * x2.dtype.itemsize
    scratch_bytes = tm * (IN_DIM * 2 + HID_DIM * 4 + Cp * 4)
    vmem_limit = int(min(
        64 << 20,
        max(32 << 20, 2 * (x_bytes + w_bytes + out_bytes + scratch_bytes))))

    out = pl.pallas_call(
        _mlp_head_kernel,
        out_shape=jax.ShapeDtypeStruct((M, Cp), x2.dtype),
        grid_spec=pltpu.PrefetchScalarGridSpec(
            num_scalar_prefetch=0,
            grid=grid,
            in_specs=[
                pl.BlockSpec((tm, IN_DIM), lambda i: (i, 0)),
                # Constant index maps: weights stay VMEM-resident across the
                # whole M grid (no per-step DMA after the first fetch).
                pl.BlockSpec((IN_DIM, HID_DIM), lambda i: (0, 0)),
                pl.BlockSpec((HID_DIM, Cp), lambda i: (0, 0)),
            ],
            out_specs=pl.BlockSpec((tm, Cp), lambda i: (i, 0)),
        ),
        compiler_params=pltpu.CompilerParams(
            dimension_semantics=("parallel",),
            vmem_limit_bytes=vmem_limit,
        ),
    )(x2, w1_t, w2_t)

    out = out[:, :ano_classes]                               # drop lane padding
    return out.reshape(*orig_shape[:-1], ano_classes)


if __name__ == "__main__":
    ano_classes = 16
    batch = 8

    key = jax.random.PRNGKey(0)
    kx, k1, k2 = jax.random.split(key, 3)

    # Deterministic synthetic parameters (same shapes as the PyTorch module).
    x = jax.random.normal(kx, (batch, IN_DIM), dtype=jnp.float32)
    w1 = jax.random.normal(k1, (HID_DIM, IN_DIM), dtype=jnp.float32) * 0.02        # fc_1.weight
    w2 = jax.random.normal(k2, (ano_classes, HID_DIM), dtype=jnp.float32) * 0.02   # fc_2.weight

    # One-time parameter prep (transpose + bf16 + lane padding), outside the hot path.
    w1_t, w2_t = prepare_ano_head_params(w1, w2)
    w1_t, w2_t = jax.block_until_ready((w1_t, w2_t))

    out = ano_classification_head(x, w1_t, w2_t, ano_classes=ano_classes)
    out = jax.block_until_ready(out)
    assert out.shape == (batch, ano_classes)

    # Reference with identical numerics (bf16 operands, f32 accumulation).
    h_ref = jnp.maximum(
        jnp.dot(x.astype(jnp.bfloat16), w1.T.astype(jnp.bfloat16),
                preferred_element_type=jnp.float32), 0.0)
    ref = jnp.dot(h_ref.astype(jnp.bfloat16), w2.T.astype(jnp.bfloat16),
                  preferred_element_type=jnp.float32)
    assert jnp.allclose(out, ref, atol=1e-2, rtol=1e-2), \
        float(jnp.max(jnp.abs(out - ref)))

    # Loose check against the pure-f32 PyTorch math (bf16 MXU rounding only).
    ref_f32 = jnp.maximum(x @ w1.T, 0.0) @ w2.T
    assert jnp.allclose(out, ref_f32, atol=5e-2, rtol=5e-2)

    print("KERNEL_OK")
</pallas_src>

<mosaic_0001>
module attributes {stable_mosaic.version = 11 : i64} {
  func.func @_mlp_head_kernel(%arg0: i32, %arg1: memref<8x1024xf32, #tpu.memory_space<vmem>>, %arg2: memref<1024x512xbf16, #tpu.memory_space<vmem>>, %arg3: memref<512x128xbf16, #tpu.memory_space<vmem>>, %arg4: memref<8x128xf32, #tpu.memory_space<vmem>>) attributes {dimension_semantics = [#tpu.dimension_semantics<parallel>], iteration_bounds = array<i64: 1>, scalar_prefetch = 0 : i64, scratch_operands = 0 : i64, tpu.core_type = #tpu.core_type<tc>, window_params = [{transform_indices = @transform_0, window_bounds = array<i64: 8, 1024>}, {pipeline_mode = #tpu.pipeline_mode<synchronous>, transform_indices = @transform_1, window_bounds = array<i64: 1024, 512>}, {pipeline_mode = #tpu.pipeline_mode<synchronous>, transform_indices = @transform_2, window_bounds = array<i64: 512, 128>}, {transform_indices = @transform_3, window_bounds = array<i64: 8, 128>}]} {
    %c0 = arith.constant 0 : index
    %c0_0 = arith.constant 0 : index
    %0 = vector.load %arg1[%c0, %c0_0] : memref<8x1024xf32, #tpu.memory_space<vmem>>, vector<8x1024xf32>
    %1 = arith.truncf %0 : vector<8x1024xf32> to vector<8x1024xbf16>
    %c0_1 = arith.constant 0 : index
    %c0_2 = arith.constant 0 : index
    %2 = vector.load %arg2[%c0_1, %c0_2] : memref<1024x512xbf16, #tpu.memory_space<vmem>>, vector<1024x512xbf16>
    %cst = arith.constant dense<0.000000e+00> : vector<8x512xf32>
    %3 = tpu.matmul %1, %2, %cst {dimension_numbers = #tpu.dot_dimension_numbers<[1], [0], [0], [1], [0, 0, 1, 1], [], []>} : vector<8x1024xbf16>, vector<1024x512xbf16>, vector<8x512xf32> -> vector<8x512xf32>
    %cst_3 = arith.constant 0.000000e+00 : f32
    %4 = vector.broadcast %cst_3 : f32 to vector<8x512xf32>
    %5 = arith.maximumf %3, %4 : vector<8x512xf32>
    %6 = arith.truncf %5 : vector<8x512xf32> to vector<8x512xbf16>
    %c0_4 = arith.constant 0 : index
    %c0_5 = arith.constant 0 : index
    %7 = vector.load %arg3[%c0_4, %c0_5] : memref<512x128xbf16, #tpu.memory_space<vmem>>, vector<512x128xbf16>
    %cst_6 = arith.constant dense<0.000000e+00> : vector<8x128xf32>
    %8 = tpu.matmul %6, %7, %cst_6 {dimension_numbers = #tpu.dot_dimension_numbers<[1], [0], [0], [1], [0, 0, 1, 1], [], []>} : vector<8x512xbf16>, vector<512x128xbf16>, vector<8x128xf32> -> vector<8x128xf32>
    %c0_7 = arith.constant 0 : index
    %c0_8 = arith.constant 0 : index
    %9 = vector.load %arg4[%c0_7, %c0_8] : memref<8x128xf32, #tpu.memory_space<vmem>>, vector<8x128xf32>
    tpu.vector_store %arg4[%c0_7, %c0_8], %8 {strides = array<i32>} : memref<8x128xf32, #tpu.memory_space<vmem>>, vector<8x128xf32>,
    return
  }
  func.func @transform_0(%arg0: i32) -> (i32, i32) {
    %c0_i32 = arith.constant 0 : i32
    %c0_i32_0 = arith.constant 0 : i32
    return %arg0, %c0_i32 : i32, i32
  }
  func.func @transform_1(%arg0: i32) -> (i32, i32) {
    %c0_i32 = arith.constant 0 : i32
    %c0_i32_0 = arith.constant 0 : i32
    %c0_i32_1 = arith.constant 0 : i32
    return %c0_i32, %c0_i32_0 : i32, i32
  }
  func.func @transform_2(%arg0: i32) -> (i32, i32) {
    %c0_i32 = arith.constant 0 : i32
    %c0_i32_0 = arith.constant 0 : i32
    %c0_i32_1 = arith.constant 0 : i32
    return %c0_i32, %c0_i32_0 : i32, i32
  }
  func.func @transform_3(%arg0: i32) -> (i32, i32) {
    %c0_i32 = arith.constant 0 : i32
    %c0_i32_0 = arith.constant 0 : i32
    return %arg0, %c0_i32 : i32, i32
  }
}

</mosaic_0001>

<bundles_post_ra>
// kernel: ano_classification_head.1
= control target key start
LH: loop header
LB: loop body
LE: loop exit
PB: predicated region body
PF: predicated region fallthrough
CT: control target
= control target key end

     0   :  { %8 = vsyncpa [#allocation3], 0  ;;  %s3246_s0 = inlined_call_operand.hbm [shape: f32[8,1024], index: 0, kind: input, shape index: {}]   ;;  %s3247_s1 = inlined_call_operand.hbm [shape: bf16[1024,512], index: 1, kind: input, shape index: {}]   ;;  %s3248_s2 = inlined_call_operand.hbm [shape: bf16[512,128], index: 2, kind: input, shape index: {}]   ;;  %s3249_s3 = inlined_call_operand.hbm [shape: f32[8,128], index: 3, kind: output, shape index: {}]  }
   0x1   :  { %9 = vsyncpa [#allocation6], 0 }
   0x2   :  { %10 = vsyncpa [#allocation4], 0  ;;  %s3170_s12 = smov [#allocation5]   ;;  %s3076_s16 = scalar_lea.hbm %s3247_s1, 32768 }
   0x3   :  { %s26_s13 = sshll.u32 %s3170_s12, 4  ;;  %p3077_p0 = scmp.ne.s32.totalorder %s3247_s1, %s3076_s16  ;;  %s27_s13 = int_to_ptr.vmem [resolvable:$true] %s26_s13 }
   0x4   :  { %p3080_p1 = scmp.lt.u32.totalorder %s3076_s16, %s3247_s1 }
   0x6   :  { %p3082_p2 = pnand %p3080_p1, %p3077_p0 }
   0x8   :  { %3085 = shalt.err (!%p3082_p2)
}
   0x9   :  { %s3086_s21 = scalar_lea.vmem %s27_s13, 32768  ;;  %p3091_p4 = scmp.lt.s32.totalorder %s27_s13, %s27_s13 }
   0xa   :  { %p3087_p3 = scmp.ne.s32.totalorder %s27_s13, %s3086_s21  ;;  %p3092_p5 = scmp.lt.s32.totalorder %s3086_s21, %s3086_s21 }
   0xc   :  { %p3093_p6 = por %p3092_p5, %p3091_p4 }
   0xe   :  { %p3094_p7 = pnand %p3093_p6, %p3087_p3 }
  0x10   :  { %3097 = shalt.err (!%p3094_p7)
}
  0x11   :  { %s3171_s22 = smov 256   ;;  %s3172_s23 = smov 16  }
  0x12   :  { %32 = dma.hbm_to_vmem [thread:$0]  %s3247_s1, 32768, %s27_s13, [#allocation6], %s3171_s22, %s3171_s22, %s3172_s23  }
  0x13   :  { %s3173_s26 = smov [#allocation2]   ;;  %s3174_s28 = smov [#allocation7]  }
  0x14   :  { %s17_s27 = sshll.u32 %s3173_s26, 4  ;;  %s38_s29 = sshll.u32 %s3174_s28, 4  ;;  %s18_s27 = int_to_ptr.vmem [resolvable:$true] %s17_s27  ;;  %s39_s29 = int_to_ptr.vmem [resolvable:$true] %s38_s29 }
  0x15   :  { %s3098_s5 = scalar_lea.hbm %s3246_s0, 1024 }
  0x16   :  { %p3099_p8 = scmp.ne.s32.totalorder %s3246_s0, %s3098_s5  ;;  %p3102_p9 = scmp.lt.u32.totalorder %s3098_s5, %s3246_s0 }
  0x18   :  { %p3104_p10 = pnand %p3102_p9, %p3099_p8 }
  0x1a   :  { %3107 = shalt.err (!%p3104_p10)
}
  0x1b   :  { %s3108_s1 = scalar_lea.vmem %s18_s27, 1024  ;;  %p3113_p12 = scmp.lt.s32.totalorder %s18_s27, %s18_s27 }
  0x1c   :  { %p3109_p11 = scmp.ne.s32.totalorder %s18_s27, %s3108_s1  ;;  %p3114_p13 = scmp.lt.s32.totalorder %s3108_s1, %s3108_s1 }
  0x1e   :  { %p3115_p0 = por %p3114_p13, %p3113_p12 }
  0x20   :  { %p3116_p1 = pnand %p3115_p0, %p3109_p11 }
  0x22   :  { %3119 = shalt.err (!%p3116_p1)
}
  0x23   :  { %20 = dma.hbm_to_vmem [thread:$0]  %s3246_s0, 1024, %s18_s27, [#allocation3]  }
  0x24   :  { %s3120_s14 = scalar_lea.hbm %s3248_s2, 4096 }
  0x25   :  { %p3121_p2 = scmp.ne.s32.totalorder %s3248_s2, %s3120_s14  ;;  %p3124_p3 = scmp.lt.u32.totalorder %s3120_s14, %s3248_s2 }
  0x27   :  { %p3126_p4 = pnand %p3124_p3, %p3121_p2 }
  0x29   :  { %3129 = shalt.err (!%p3126_p4)
}
  0x2a   :  { %s3130_s19 = scalar_lea.vmem %s39_s29, 4096  ;;  %p3135_p6 = scmp.lt.s32.totalorder %s39_s29, %s39_s29 }
  0x2b   :  { %p3131_p5 = scmp.ne.s32.totalorder %s39_s29, %s3130_s19  ;;  %p3136_p7 = scmp.lt.s32.totalorder %s3130_s19, %s3130_s19 }
  0x2d   :  { %p3137_p8 = por %p3136_p7, %p3135_p6 }
  0x2f   :  { %p3138_p9 = pnand %p3137_p8, %p3131_p5 }
  0x31   :  { %3141 = shalt.err (!%p3138_p9)
}
  0x32   :  { %s3175_s0 = smov 64   ;;  %s3176_s20 = smov 4  }
  0x33   :  { %44 = dma.hbm_to_vmem [thread:$0]  %s3248_s2, 4096, %s39_s29, [#allocation6], %s3175_s0, %s3175_s0, %s3176_s20  }
  0x34   :  { %3164 = dma.done.wait [#allocation3], 1024  }
  0x35   :  { %3165 = vsyncadd [#allocation3], 4294966272 }
  0x36   :  { %3166 = dma.done.wait [#allocation6], 36864  }
  0x37   :  { %3167 = vsyncadd [#allocation6], 4294930432  ;;  %v2660_v0 = vld [vmem:[#allocation5 + $0x4] ss:$16 sps:$4 sm:$0xff]   ;;  %v2662_v1 = vld [vmem:[#allocation5 + $0xc] ss:$16 sps:$4 sm:$0xff]  }
  0x38   :  { %1607 = vmatprep.subr.bf16.mxu0 %v2660_v0  ;;  %v2664_v2 = vld [vmem:[#allocation5] ss:$16 sps:$4 sm:$0xff]   ;;  %v2665_v3 = vld [vmem:[#allocation5 + $0x8] ss:$16 sps:$4 sm:$0xff]   ;;  %1771 = vmatprep.subr.bf16.mxu1 %v2662_v1  ;;  %v2666_v4 = vld [vmem:[#allocation5 + $0x24] ss:$16 sps:$4 sm:$0xff]  }
  0x39   :  { %1608 = vmatpush1.bf16.msra.mxu0 %v2664_v2  ;;  %1772 = vmatpush1.bf16.msra.mxu1 %v2665_v3  ;;  %v2668_v5 = vld [vmem:[#allocation5 + $0x2c] ss:$16 sps:$4 sm:$0xff]   ;;  %v2670_v6 = vld [vmem:[#allocation5 + $0x20] ss:$16 sps:$4 sm:$0xff]   ;;  %v2671_v7 = vld [vmem:[#allocation5 + $0x28] ss:$16 sps:$4 sm:$0xff]  }
  0x3a   :  { %1609 = vmatprep.subr.bf16.mxu0 %v2666_v4  ;;  %1773 = vmatprep.subr.bf16.mxu1 %v2668_v5  ;;  %v2672_v8 = vld [vmem:[#allocation5 + $0x44] ss:$16 sps:$4 sm:$0xff]   ;;  %v2674_v9 = vld [vmem:[#allocation5 + $0x4c] ss:$16 sps:$4 sm:$0xff]   ;;  %v2676_v10 = vld [vmem:[#allocation5 + $0x40] ss:$16 sps:$4 sm:$0xff]  }
  0x3b   :  { %v2677_v11 = vld [vmem:[#allocation5 + $0x48] ss:$16 sps:$4 sm:$0xff]   ;;  %v2678_v12 = vld [vmem:[#allocation5 + $0x64] ss:$16 sps:$4 sm:$0xff]   ;;  %v2680_v13 = vld [vmem:[#allocation5 + $0x6c] ss:$16 sps:$4 sm:$0xff]  }
  0x3c   :  { %v2682_v14 = vld [vmem:[#allocation5 + $0x60] ss:$16 sps:$4 sm:$0xff]   ;;  %v2683_v15 = vld [vmem:[#allocation5 + $0x68] ss:$16 sps:$4 sm:$0xff]   ;;  %v2684_v16 = vld [vmem:[#allocation5 + $0x84] ss:$16 sps:$4 sm:$0xff]  }
  0x3d   :  { %1610 = vmatpush1.bf16.msra.mxu0 %v2670_v6  ;;  %1774 = vmatpush1.bf16.msra.mxu1 %v2671_v7  ;;  %v2686_v17 = vld [vmem:[#allocation5 + $0x8c] ss:$16 sps:$4 sm:$0xff]   ;;  %v2688_v18 = vld [vmem:[#allocation5 + $0x80] ss:$16 sps:$4 sm:$0xff]   ;;  %v2689_v19 = vld [vmem:[#allocation5 + $0x88] ss:$16 sps:$4 sm:$0xff]  }
  0x3e   :  { %1611 = vmatprep.subr.bf16.mxu0 %v2672_v8  ;;  %1775 = vmatprep.subr.bf16.mxu1 %v2674_v9  ;;  %v2690_v20 = vld [vmem:[#allocation5 + $0xa4] ss:$16 sps:$4 sm:$0xff]   ;;  %v2692_v21 = vld [vmem:[#allocation5 + $0xac] ss:$16 sps:$4 sm:$0xff]   ;;  %v2694_v22 = vld [vmem:[#allocation5 + $0xa0] ss:$16 sps:$4 sm:$0xff]  }
  0x3f   :  { %v2695_v23 = vld [vmem:[#allocation5 + $0xa8] ss:$16 sps:$4 sm:$0xff]   ;;  %v2696_v24 = vld [vmem:[#allocation5 + $0xc4] ss:$16 sps:$4 sm:$0xff]   ;;  %v2698_v25 = vld [vmem:[#allocation5 + $0xcc] ss:$16 sps:$4 sm:$0xff]  }
  0x40   :  { %v2700_v26 = vld [vmem:[#allocation5 + $0xc0] ss:$16 sps:$4 sm:$0xff]   ;;  %v2701_v27 = vld [vmem:[#allocation5 + $0xc8] ss:$16 sps:$4 sm:$0xff]   ;;  %v2702_v28 = vld [vmem:[#allocation5 + $0xe4] ss:$16 sps:$4 sm:$0xff]  }
  0x41   :  { %1612 = vmatpush1.bf16.msra.mxu0 %v2676_v10  ;;  %1776 = vmatpush1.bf16.msra.mxu1 %v2677_v11  ;;  %v2704_v29 = vld [vmem:[#allocation5 + $0xec] ss:$16 sps:$4 sm:$0xff]   ;;  %v2706_v30 = vld [vmem:[#allocation5 + $0xe0] ss:$16 sps:$4 sm:$0xff]   ;;  %v2707_v31 = vld [vmem:[#allocation5 + $0xe8] ss:$16 sps:$4 sm:$0xff]  }
  0x42   :  { %1613 = vmatprep.subr.bf16.mxu0 %v2678_v12  ;;  %1777 = vmatprep.subr.bf16.mxu1 %v2680_v13  ;;  %v2708_v32 = vld [vmem:[#allocation5 + $0x104] ss:$16 sps:$4 sm:$0xff]   ;;  %v2710_v33 = vld [vmem:[#allocation5 + $0x10c] ss:$16 sps:$4 sm:$0xff]   ;;  %v2712_v34 = vld [vmem:[#allocation5 + $0x100] ss:$16 sps:$4 sm:$0xff]  }
  0x43   :  { %v2713_v35 = vld [vmem:[#allocation5 + $0x108] ss:$16 sps:$4 sm:$0xff]   ;;  %v2714_v36 = vld [vmem:[#allocation5 + $0x124] ss:$16 sps:$4 sm:$0xff]   ;;  %v2716_v37 = vld [vmem:[#allocation5 + $0x12c] ss:$16 sps:$4 sm:$0xff]  }
  0x44   :  { %v2718_v38 = vld [vmem:[#allocation5 + $0x120] ss:$16 sps:$4 sm:$0xff]   ;;  %v2719_v39 = vld [vmem:[#allocation5 + $0x128] ss:$16 sps:$4 sm:$0xff]   ;;  %v2720_v40 = vld [vmem:[#allocation5 + $0x144] ss:$16 sps:$4 sm:$0xff]  }
  0x45   :  { %1614 = vmatpush1.bf16.msra.mxu0 %v2682_v14  ;;  %1778 = vmatpush1.bf16.msra.mxu1 %v2683_v15  ;;  %v2722_v41 = vld [vmem:[#allocation5 + $0x14c] ss:$16 sps:$4 sm:$0xff]   ;;  %v2724_v42 = vld [vmem:[#allocation5 + $0x140] ss:$16 sps:$4 sm:$0xff]   ;;  %v2725_v43 = vld [vmem:[#allocation5 + $0x148] ss:$16 sps:$4 sm:$0xff]  }
  0x46   :  { %1615 = vmatprep.subr.bf16.mxu0 %v2684_v16  ;;  %1779 = vmatprep.subr.bf16.mxu1 %v2686_v17  ;;  %v2726_v44 = vld [vmem:[#allocation5 + $0x164] ss:$16 sps:$4 sm:$0xff]   ;;  %v2728_v45 = vld [vmem:[#allocation5 + $0x16c] ss:$16 sps:$4 sm:$0xff]   ;;  %v2730_v47 = vld [vmem:[#allocation5 + $0x160] ss:$16 sps:$4 sm:$0xff]  }
  0x47   :  { %v56_v46 = vld [vmem:[#allocation2 + $0x8] sm:$0xff]  ;;  %v2732_v50 = vld [vmem:[#allocation5 + $0x184] ss:$16 sps:$4 sm:$0xff]   ;;  %v2736_v52 = vld [vmem:[#allocation5 + $0x180] ss:$16 sps:$4 sm:$0xff]   ;;  %s3177_s2 = smov [#allocation8]  }
  0x48   :  { %v64_v48 = vpack.c.bf16 %v56_v46, %v56_v46  ;;  %v2731_v49 = vld [vmem:[#allocation5 + $0x168] ss:$16 sps:$4 sm:$0xff]   ;;  %v2734_v51 = vld [vmem:[#allocation5 + $0x18c] ss:$16 sps:$4 sm:$0xff]   ;;  %v2738_v54 = vld [vmem:[#allocation5 + $0x1a4] ss:$16 sps:$4 sm:$0xff]  }
  0x49   :  { %1616 = vmatpush1.bf16.msra.mxu0 %v2688_v18  ;;  %1780 = vmatpush1.bf16.msra.mxu1 %v2689_v19  ;;  %v2737_v53 = vld [vmem:[#allocation5 + $0x188] ss:$16 sps:$4 sm:$0xff]   ;;  %v2740_v55 = vld [vmem:[#allocation5 + $0x1ac] ss:$16 sps:$4 sm:$0xff]   ;;  %v2742_v56 = vld [vmem:[#allocation5 + $0x1a0] ss:$16 sps:$4 sm:$0xff]  }
  0x4a   :  { %1617 = vmatprep.subr.bf16.mxu0 %v2690_v20  ;;  %1781 = vmatprep.subr.bf16.mxu1 %v2692_v21  ;;  %v2743_v57 = vld [vmem:[#allocation5 + $0x1a8] ss:$16 sps:$4 sm:$0xff]   ;;  %v2744_v58 = vld [vmem:[#allocation5 + $0x1c4] ss:$16 sps:$4 sm:$0xff]   ;;  %v2746_v59 = vld [vmem:[#allocation5 + $0x1cc] ss:$16 sps:$4 sm:$0xff]  }
  0x4b   :  { %1639 = vmatprep.mubr.bf16.mxu0 %v64_v48  ;;  %1803 = vmatprep.mubr.bf16.mxu1 %v64_v48  ;;  %v2748_v60 = vld [vmem:[#allocation5 + $0x1c0] ss:$16 sps:$4 sm:$0xff]   ;;  %v2749_v61 = vld [vmem:[#allocation5 + $0x1c8] ss:$16 sps:$4 sm:$0xff]   ;;  %v2750_v62 = vld [vmem:[#allocation5 + $0x1e4] ss:$16 sps:$4 sm:$0xff]  }
  0x4c   :  { %v2752_v63 = vld [vmem:[#allocation5 + $0x1ec] ss:$16 sps:$4 sm:$0xff]   ;;  %v2754_v0 = vld [vmem:[#allocation5 + $0x1e0] ss:$16 sps:$4 sm:$0xff]   ;;  %v2755_v1 = vld [vmem:[#allocation5 + $0x1e8] ss:$16 sps:$4 sm:$0xff]  }
  0x4d   :  { %1618 = vmatpush1.bf16.msra.mxu0 %v2694_v22  ;;  %1782 = vmatpush1.bf16.msra.mxu1 %v2695_v23  ;;  %v55_v2 = vld [vmem:[#allocation2] sm:$0xff]  ;;  %v2761_v4 = vld [vmem:[#allocation5 + $0x20c] ss:$16 sps:$4 sm:$0xff]   ;;  %v2759_v7 = vld [vmem:[#allocation5 + $0x208] ss:$16 sps:$4 sm:$0xff]   ;;  %s2286_s23 = sshll.u32 %s3177_s2, 4  ;;  %s2287_s23 = int_to_ptr.vmem [resolvable:$true] %s2286_s23 }
  0x4e   :  { %1619 = vmatprep.subr.bf16.mxu0 %v2696_v24  ;;  %1783 = vmatprep.subr.bf16.mxu1 %v2698_v25  ;;  %v2758_v3 = vld [vmem:[#allocation5 + $0x204] ss:$16 sps:$4 sm:$0xff]   ;;  %v63_v5 = vpack.c.bf16 %v55_v2, %v55_v2  ;;  %v2756_v6 = vld [vmem:[#allocation5 + $0x200] ss:$16 sps:$4 sm:$0xff]   ;;  %v2767_v9 = vld [vmem:[#allocation5 + $0x22c] ss:$16 sps:$4 sm:$0xff]   ;;  %p3147_p11 = scmp.lt.s32.totalorder %s2287_s23, %s2287_s23 }
  0x4f   :  { %v2764_v8 = vld [vmem:[#allocation5 + $0x224] ss:$16 sps:$4 sm:$0xff]   ;;  %v2762_v10 = vld [vmem:[#allocation5 + $0x220] ss:$16 sps:$4 sm:$0xff]   ;;  %v2765_v11 = vld [vmem:[#allocation5 + $0x228] ss:$16 sps:$4 sm:$0xff]  }
  0x50   :  { %v2770_v12 = vld [vmem:[#allocation5 + $0x244] ss:$16 sps:$4 sm:$0xff]   ;;  %v2773_v13 = vld [vmem:[#allocation5 + $0x24c] ss:$16 sps:$4 sm:$0xff]   ;;  %v2768_v14 = vld [vmem:[#allocation5 + $0x240] ss:$16 sps:$4 sm:$0xff]  }
  0x51   :  { %1620 = vmatpush1.bf16.msra.mxu0 %v2700_v26  ;;  %1784 = vmatpush1.bf16.msra.mxu1 %v2701_v27  ;;  %v2771_v15 = vld [vmem:[#allocation5 + $0x248] ss:$16 sps:$4 sm:$0xff]   ;;  %v2776_v16 = vld [vmem:[#allocation5 + $0x264] ss:$16 sps:$4 sm:$0xff]   ;;  %v2779_v17 = vld [vmem:[#allocation5 + $0x26c] ss:$16 sps:$4 sm:$0xff]  }
  0x52   :  { %1621 = vmatprep.subr.bf16.mxu0 %v2702_v28  ;;  %1785 = vmatprep.subr.bf16.mxu1 %v2704_v29  ;;  %v2774_v18 = vld [vmem:[#allocation5 + $0x260] ss:$16 sps:$4 sm:$0xff]   ;;  %v2777_v19 = vld [vmem:[#allocation5 + $0x268] ss:$16 sps:$4 sm:$0xff]   ;;  %v2782_v20 = vld [vmem:[#allocation5 + $0x284] ss:$16 sps:$4 sm:$0xff]  }
  0x53   :  { %v2785_v21 = vld [vmem:[#allocation5 + $0x28c] ss:$16 sps:$4 sm:$0xff]   ;;  %v2780_v22 = vld [vmem:[#allocation5 + $0x280] ss:$16 sps:$4 sm:$0xff]   ;;  %v2783_v23 = vld [vmem:[#allocation5 + $0x288] ss:$16 sps:$4 sm:$0xff]  }
  0x54   :  { %v2788_v24 = vld [vmem:[#allocation5 + $0x2a4] ss:$16 sps:$4 sm:$0xff]   ;;  %v2791_v25 = vld [vmem:[#allocation5 + $0x2ac] ss:$16 sps:$4 sm:$0xff]   ;;  %v2786_v26 = vld [vmem:[#allocation5 + $0x2a0] ss:$16 sps:$4 sm:$0xff]  }
  0x55   :  { %1622 = vmatpush1.bf16.msra.mxu0 %v2706_v30  ;;  %1786 = vmatpush1.bf16.msra.mxu1 %v2707_v31  ;;  %v2789_v27 = vld [vmem:[#allocation5 + $0x2a8] ss:$16 sps:$4 sm:$0xff]   ;;  %v2794_v28 = vld [vmem:[#allocation5 + $0x2c4] ss:$16 sps:$4 sm:$0xff]   ;;  %v2797_v29 = vld [vmem:[#allocation5 + $0x2cc] ss:$16 sps:$4 sm:$0xff]  }
  0x56   :  { %1623 = vmatprep.subr.bf16.mxu0 %v2708_v32  ;;  %1787 = vmatprep.subr.bf16.mxu1 %v2710_v33  ;;  %v58_v30 = vld [vmem:[#allocation2 + $0x18] sm:$0xff]  ;;  %v2792_v31 = vld [vmem:[#allocation5 + $0x2c0] ss:$16 sps:$4 sm:$0xff]   ;;  %v2818_v46 = vld [vmem:[#allocation5 + $0x344] ss:$16 sps:$4 sm:$0xff]   ;;  %s3142_s24 = scalar_lea.vmem %s2287_s23, 128 }
  0x57   :  { %v66_v32 = vpack.c.bf16 %v58_v30, %v58_v30  ;;  %v2795_v33 = vld [vmem:[#allocation5 + $0x2c8] ss:$16 sps:$4 sm:$0xff]   ;;  %v2816_v48 = vld [vmem:[#allocation5 + $0x340] ss:$16 sps:$4 sm:$0xff]   ;;  %v2848_v2 = vld [vmem:[#allocation5 + $0x3e4] ss:$16 sps:$4 sm:$0xff]   ;;  %p3143_p10 = scmp.ne.s32.totalorder %s2287_s23, %s3142_s24  ;;  %p3148_p12 = scmp.lt.s32.totalorder %s3142_s24, %s3142_s24 }
  0x58   :  { %v2884_v30 = vld [vmem:[#allocation5 + $0x4a4] ss:$16 sps:$4 sm:$0xff]  }
  0x59   :  { %1624 = vmatpush1.bf16.msra.mxu0 %v2712_v34  ;;  %1788 = vmatpush1.bf16.msra.mxu1 %v2713_v35  ;;  %v2800_v34 = vld [vmem:[#allocation5 + $0x2e4] ss:$16 sps:$4 sm:$0xff]   ;;  %v2803_v35 = vld [vmem:[#allocation5 + $0x2ec] ss:$16 sps:$4 sm:$0xff]   ;;  %p3149_p13 = por %p3148_p12, %p3147_p11 }
  0x5a   :  { %1625 = vmatprep.subr.bf16.mxu0 %v2714_v36  ;;  %1789 = vmatprep.subr.bf16.mxu1 %v2716_v37  ;;  %v2798_v36 = vld [vmem:[#allocation5 + $0x2e0] ss:$16 sps:$4 sm:$0xff]   ;;  %v2801_v37 = vld [vmem:[#allocation5 + $0x2e8] ss:$16 sps:$4 sm:$0xff]  }
  0x5b   :  { %p3150_p0 = pnand %p3149_p13, %p3143_p10 }
  0x5d   :  { %1626 = vmatpush1.bf16.msra.mxu0 %v2718_v38  ;;  %1790 = vmatpush1.bf16.msra.mxu1 %v2719_v39  ;;  %v2806_v38 = vld [vmem:[#allocation5 + $0x304] ss:$16 sps:$4 sm:$0xff]   ;;  %v2809_v39 = vld [vmem:[#allocation5 + $0x30c] ss:$16 sps:$4 sm:$0xff]  }
  0x5e   :  { %1627 = vmatprep.subr.bf16.mxu0 %v2720_v40  ;;  %1791 = vmatprep.subr.bf16.mxu1 %v2722_v41  ;;  %v2804_v40 = vld [vmem:[#allocation5 + $0x300] ss:$16 sps:$4 sm:$0xff]   ;;  %v2807_v41 = vld [vmem:[#allocation5 + $0x308] ss:$16 sps:$4 sm:$0xff]  }
  0x61   :  { %1628 = vmatpush1.bf16.msra.mxu0 %v2724_v42  ;;  %1792 = vmatpush1.bf16.msra.mxu1 %v2725_v43  ;;  %v2812_v42 = vld [vmem:[#allocation5 + $0x324] ss:$16 sps:$4 sm:$0xff]   ;;  %v2815_v43 = vld [vmem:[#allocation5 + $0x32c] ss:$16 sps:$4 sm:$0xff]  }
  0x62   :  { %1629 = vmatprep.subr.bf16.mxu0 %v2726_v44  ;;  %1793 = vmatprep.subr.bf16.mxu1 %v2728_v45  ;;  %v2810_v44 = vld [vmem:[#allocation5 + $0x320] ss:$16 sps:$4 sm:$0xff]   ;;  %v2813_v45 = vld [vmem:[#allocation5 + $0x328] ss:$16 sps:$4 sm:$0xff]  }
  0x65   :  { %1630 = vmatpush1.bf16.msra.mxu0 %v2730_v47  ;;  %1794 = vmatpush1.bf16.msra.mxu1 %v2731_v49  ;;  %v2821_v47 = vld [vmem:[#allocation5 + $0x34c] ss:$16 sps:$4 sm:$0xff]   ;;  %v2819_v49 = vld [vmem:[#allocation5 + $0x348] ss:$16 sps:$4 sm:$0xff]  }
  0x66   :  { %1631 = vmatprep.subr.bf16.mxu0 %v2732_v50  ;;  %1795 = vmatprep.subr.bf16.mxu1 %v2734_v51  ;;  %v2824_v50 = vld [vmem:[#allocation5 + $0x364] ss:$16 sps:$4 sm:$0xff]   ;;  %v2827_v51 = vld [vmem:[#allocation5 + $0x36c] ss:$16 sps:$4 sm:$0xff]  }
  0x69   :  { %1632 = vmatpush1.bf16.msra.mxu0 %v2736_v52  ;;  %1796 = vmatpush1.bf16.msra.mxu1 %v2737_v53  ;;  %v2822_v52 = vld [vmem:[#allocation5 + $0x360] ss:$16 sps:$4 sm:$0xff]   ;;  %v2825_v53 = vld [vmem:[#allocation5 + $0x368] ss:$16 sps:$4 sm:$0xff]  }
  0x6a   :  { %1633 = vmatprep.subr.bf16.mxu0 %v2738_v54  ;;  %1797 = vmatprep.subr.bf16.mxu1 %v2740_v55  ;;  %v2830_v54 = vld [vmem:[#allocation5 + $0x384] ss:$16 sps:$4 sm:$0xff]   ;;  %v2833_v55 = vld [vmem:[#allocation5 + $0x38c] ss:$16 sps:$4 sm:$0xff]  }
  0x6d   :  { %1634 = vmatpush1.bf16.msra.mxu0 %v2742_v56  ;;  %1798 = vmatpush1.bf16.msra.mxu1 %v2743_v57  ;;  %v2828_v56 = vld [vmem:[#allocation5 + $0x380] ss:$16 sps:$4 sm:$0xff]   ;;  %v2831_v57 = vld [vmem:[#allocation5 + $0x388] ss:$16 sps:$4 sm:$0xff]  }
  0x6e   :  { %1635 = vmatprep.subr.bf16.mxu0 %v2744_v58  ;;  %1799 = vmatprep.subr.bf16.mxu1 %v2746_v59  ;;  %v2836_v58 = vld [vmem:[#allocation5 + $0x3a4] ss:$16 sps:$4 sm:$0xff]   ;;  %v2839_v59 = vld [vmem:[#allocation5 + $0x3ac] ss:$16 sps:$4 sm:$0xff]  }
  0x71   :  { %1636 = vmatpush1.bf16.msra.mxu0 %v2748_v60  ;;  %1800 = vmatpush1.bf16.msra.mxu1 %v2749_v61  ;;  %v2834_v60 = vld [vmem:[#allocation5 + $0x3a0] ss:$16 sps:$4 sm:$0xff]   ;;  %v2837_v61 = vld [vmem:[#allocation5 + $0x3a8] ss:$16 sps:$4 sm:$0xff]  }
  0x72   :  { %1637 = vmatprep.subr.bf16.mxu0 %v2750_v62  ;;  %1801 = vmatprep.subr.bf16.mxu1 %v2752_v63  ;;  %v2842_v62 = vld [vmem:[#allocation5 + $0x3c4] ss:$16 sps:$4 sm:$0xff]   ;;  %v2845_v63 = vld [vmem:[#allocation5 + $0x3cc] ss:$16 sps:$4 sm:$0xff]  }
  0x75   :  { %1638 = vmatpush1.bf16.msra.mxu0 %v2754_v0  ;;  %1802 = vmatpush1.bf16.msra.mxu1 %v2755_v1  ;;  %v2840_v0 = vld [vmem:[#allocation5 + $0x3c0] ss:$16 sps:$4 sm:$0xff]   ;;  %v2843_v1 = vld [vmem:[#allocation5 + $0x3c8] ss:$16 sps:$4 sm:$0xff]  }
  0x76   :  { %1648 = vmatprep.subr.bf16.mxu0 %v2758_v3  ;;  %1812 = vmatprep.subr.bf16.mxu1 %v2761_v4  ;;  %v2851_v3 = vld [vmem:[#allocation5 + $0x3ec] ss:$16 sps:$4 sm:$0xff]   ;;  %v2846_v4 = vld [vmem:[#allocation5 + $0x3e0] ss:$16 sps:$4 sm:$0xff]  }
  0x78   :  { %1640 = vmatmul.mubr.bf16.vlgmr.msra.gmra.mrb[0].mxu0 %v63_v5  ;;  %1804 = vmatmul.mubr.bf16.vlgmr.msra.gmra.mrb[0].mxu1 %v63_v5  ;;  %v2849_v5 = vld [vmem:[#allocation5 + $0x3e8] ss:$16 sps:$4 sm:$0xff]  }
  0x79   :  { %1649 = vmatpush1.bf16.msra.mxu0 %v2756_v6  ;;  %1813 = vmatpush1.bf16.msra.mxu1 %v2759_v7  ;;  %v2854_v6 = vld [vmem:[#allocation5 + $0x404] ss:$16 sps:$4 sm:$0xff]  }
  0x7a   :  { %1650 = vmatprep.subr.bf16.mxu0 %v2764_v8  ;;  %1814 = vmatprep.subr.bf16.mxu1 %v2767_v9  ;;  %v57_v7 = vld [vmem:[#allocation2 + $0x10] sm:$0xff]  ;;  %v2857_v8 = vld [vmem:[#allocation5 + $0x40c] ss:$16 sps:$4 sm:$0xff]  }
  0x7b   :  { %1680 = vmatprep.mubr.bf16.mxu0 %v66_v32  ;;  %1844 = vmatprep.mubr.bf16.mxu1 %v66_v32  ;;  %v2852_v9 = vld [vmem:[#allocation5 + $0x400] ss:$16 sps:$4 sm:$0xff]  }
  0x7c   :  { %v2882_v32 = vld [vmem:[#allocation5 + $0x4a0] ss:$16 sps:$4 sm:$0xff]  }
  0x7d   :  { %1651 = vmatpush1.bf16.msra.mxu0 %v2762_v10  ;;  %1815 = vmatpush1.bf16.msra.mxu1 %v2765_v11  ;;  %v2855_v10 = vld [vmem:[#allocation5 + $0x408] ss:$16 sps:$4 sm:$0xff]   ;;  %v65_v11 = vpack.c.bf16 %v57_v7, %v57_v7  ;;  %v2947_v7 = vld [vmem:[#allocation5 + $0x5ec] ss:$16 sps:$4 sm:$0xff]  }
  0x7e   :  { %1652 = vmatprep.subr.bf16.mxu0 %v2770_v12  ;;  %1816 = vmatprep.subr.bf16.mxu1 %v2773_v13  ;;  %v2860_v12 = vld [vmem:[#allocation5 + $0x424] ss:$16 sps:$4 sm:$0xff]   ;;  %v2863_v13 = vld [vmem:[#allocation5 + $0x42c] ss:$16 sps:$4 sm:$0xff]  }
  0x81   :  { %1653 = vmatpush1.bf16.msra.mxu0 %v2768_v14  ;;  %1817 = vmatpush1.bf16.msra.mxu1 %v2771_v15  ;;  %v60_v14 = vld [vmem:[#allocation2 + $0x28] sm:$0xff] }
  0x82   :  { %1654 = vmatprep.subr.bf16.mxu0 %v2776_v16  ;;  %1818 = vmatprep.subr.bf16.mxu1 %v2779_v17  ;;  %v68_v15 = vpack.c.bf16 %v60_v14, %v60_v14  ;;  %v2858_v16 = vld [vmem:[#allocation5 + $0x420] ss:$16 sps:$4 sm:$0xff]   ;;  %v2861_v17 = vld [vmem:[#allocation5 + $0x428] ss:$16 sps:$4 sm:$0xff]  }
  0x83   :  { %v2951_v14 = vld [vmem:[#allocation5 + $0x608] ss:$16 sps:$4 sm:$0xff]  }
  0x85   :  { %1655 = vmatpush1.bf16.msra.mxu0 %v2774_v18  ;;  %1819 = vmatpush1.bf16.msra.mxu1 %v2777_v19  ;;  %v2866_v18 = vld [vmem:[#allocation5 + $0x444] ss:$16 sps:$4 sm:$0xff]   ;;  %v2869_v19 = vld [vmem:[#allocation5 + $0x44c] ss:$16 sps:$4 sm:$0xff]  }
  0x86   :  { %1656 = vmatprep.subr.bf16.mxu0 %v2782_v20  ;;  %1820 = vmatprep.subr.bf16.mxu1 %v2785_v21  ;;  %v2864_v20 = vld [vmem:[#allocation5 + $0x440] ss:$16 sps:$4 sm:$0xff]   ;;  %v2867_v21 = vld [vmem:[#allocation5 + $0x448] ss:$16 sps:$4 sm:$0xff]  }
  0x89   :  { %1657 = vmatpush1.bf16.msra.mxu0 %v2780_v22  ;;  %1821 = vmatpush1.bf16.msra.mxu1 %v2783_v23  ;;  %v2872_v22 = vld [vmem:[#allocation5 + $0x464] ss:$16 sps:$4 sm:$0xff]   ;;  %v2875_v23 = vld [vmem:[#allocation5 + $0x46c] ss:$16 sps:$4 sm:$0xff]  }
  0x8a   :  { %1658 = vmatprep.subr.bf16.mxu0 %v2788_v24  ;;  %1822 = vmatprep.subr.bf16.mxu1 %v2791_v25  ;;  %v2870_v24 = vld [vmem:[#allocation5 + $0x460] ss:$16 sps:$4 sm:$0xff]   ;;  %v2873_v25 = vld [vmem:[#allocation5 + $0x468] ss:$16 sps:$4 sm:$0xff]  }
  0x8d   :  { %1659 = vmatpush1.bf16.msra.mxu0 %v2786_v26  ;;  %1823 = vmatpush1.bf16.msra.mxu1 %v2789_v27  ;;  %v2878_v26 = vld [vmem:[#allocation5 + $0x484] ss:$16 sps:$4 sm:$0xff]   ;;  %v2881_v27 = vld [vmem:[#allocation5 + $0x48c] ss:$16 sps:$4 sm:$0xff]  }
  0x8e   :  { %1660 = vmatprep.subr.bf16.mxu0 %v2794_v28  ;;  %1824 = vmatprep.subr.bf16.mxu1 %v2797_v29  ;;  %v2876_v28 = vld [vmem:[#allocation5 + $0x480] ss:$16 sps:$4 sm:$0xff]   ;;  %v2879_v29 = vld [vmem:[#allocation5 + $0x488] ss:$16 sps:$4 sm:$0xff]  }
  0x91   :  { %1661 = vmatpush1.bf16.msra.mxu0 %v2792_v31  ;;  %1825 = vmatpush1.bf16.msra.mxu1 %v2795_v33  ;;  %v2887_v31 = vld [vmem:[#allocation5 + $0x4ac] ss:$16 sps:$4 sm:$0xff]   ;;  %v2885_v33 = vld [vmem:[#allocation5 + $0x4a8] ss:$16 sps:$4 sm:$0xff]  }
  0x92   :  { %1662 = vmatprep.subr.bf16.mxu0 %v2800_v34  ;;  %1826 = vmatprep.subr.bf16.mxu1 %v2803_v35  ;;  %v2890_v34 = vld [vmem:[#allocation5 + $0x4c4] ss:$16 sps:$4 sm:$0xff]   ;;  %v2893_v35 = vld [vmem:[#allocation5 + $0x4cc] ss:$16 sps:$4 sm:$0xff]  }
  0x95   :  { %1663 = vmatpush1.bf16.msra.mxu0 %v2798_v36  ;;  %1827 = vmatpush1.bf16.msra.mxu1 %v2801_v37  ;;  %v2888_v36 = vld [vmem:[#allocation5 + $0x4c0] ss:$16 sps:$4 sm:$0xff]   ;;  %v2891_v37 = vld [vmem:[#allocation5 + $0x4c8] ss:$16 sps:$4 sm:$0xff]  }
  0x96   :  { %1664 = vmatprep.subr.bf16.mxu0 %v2806_v38  ;;  %1828 = vmatprep.subr.bf16.mxu1 %v2809_v39  ;;  %v2896_v38 = vld [vmem:[#allocation5 + $0x4e4] ss:$16 sps:$4 sm:$0xff]   ;;  %v2899_v39 = vld [vmem:[#allocation5 + $0x4ec] ss:$16 sps:$4 sm:$0xff]  }
  0x99   :  { %1665 = vmatpush1.bf16.msra.mxu0 %v2804_v40  ;;  %1829 = vmatpush1.bf16.msra.mxu1 %v2807_v41  ;;  %v2894_v40 = vld [vmem:[#allocation5 + $0x4e0] ss:$16 sps:$4 sm:$0xff]   ;;  %v2897_v41 = vld [vmem:[#allocation5 + $0x4e8] ss:$16 sps:$4 sm:$0xff]  }
  0x9a   :  { %1666 = vmatprep.subr.bf16.mxu0 %v2812_v42  ;;  %1830 = vmatprep.subr.bf16.mxu1 %v2815_v43  ;;  %v2902_v42 = vld [vmem:[#allocation5 + $0x504] ss:$16 sps:$4 sm:$0xff]   ;;  %v2905_v43 = vld [vmem:[#allocation5 + $0x50c] ss:$16 sps:$4 sm:$0xff]  }
  0x9d   :  { %1667 = vmatpush1.bf16.msra.mxu0 %v2810_v44  ;;  %1831 = vmatpush1.bf16.msra.mxu1 %v2813_v45  ;;  %v2900_v44 = vld [vmem:[#allocation5 + $0x500] ss:$16 sps:$4 sm:$0xff]   ;;  %v2903_v45 = vld [vmem:[#allocation5 + $0x508] ss:$16 sps:$4 sm:$0xff]  }
  0x9e   :  { %1668 = vmatprep.subr.bf16.mxu0 %v2818_v46  ;;  %1832 = vmatprep.subr.bf16.mxu1 %v2821_v47  ;;  %v2908_v46 = vld [vmem:[#allocation5 + $0x524] ss:$16 sps:$4 sm:$0xff]   ;;  %v2911_v47 = vld [vmem:[#allocation5 + $0x52c] ss:$16 sps:$4 sm:$0xff]  }
  0xa1   :  { %1669 = vmatpush1.bf16.msra.mxu0 %v2816_v48  ;;  %1833 = vmatpush1.bf16.msra.mxu1 %v2819_v49  ;;  %v2906_v48 = vld [vmem:[#allocation5 + $0x520] ss:$16 sps:$4 sm:$0xff]   ;;  %v2909_v49 = vld [vmem:[#allocation5 + $0x528] ss:$16 sps:$4 sm:$0xff]  }
  0xa2   :  { %1670 = vmatprep.subr.bf16.mxu0 %v2824_v50  ;;  %1834 = vmatprep.subr.bf16.mxu1 %v2827_v51  ;;  %v2914_v50 = vld [vmem:[#allocation5 + $0x544] ss:$16 sps:$4 sm:$0xff]   ;;  %v2917_v51 = vld [vmem:[#allocation5 + $0x54c] ss:$16 sps:$4 sm:$0xff]  }
  0xa5   :  { %1671 = vmatpush1.bf16.msra.mxu0 %v2822_v52  ;;  %1835 = vmatpush1.bf16.msra.mxu1 %v2825_v53  ;;  %v2912_v52 = vld [vmem:[#allocation5 + $0x540] ss:$16 sps:$4 sm:$0xff]   ;;  %v2915_v53 = vld [vmem:[#allocation5 + $0x548] ss:$16 sps:$4 sm:$0xff]  }
  0xa6   :  { %1672 = vmatprep.subr.bf16.mxu0 %v2830_v54  ;;  %1836 = vmatprep.subr.bf16.mxu1 %v2833_v55  ;;  %v2920_v54 = vld [vmem:[#allocation5 + $0x564] ss:$16 sps:$4 sm:$0xff]   ;;  %v2923_v55 = vld [vmem:[#allocation5 + $0x56c] ss:$16 sps:$4 sm:$0xff]  }
  0xa9   :  { %1673 = vmatpush1.bf16.msra.mxu0 %v2828_v56  ;;  %1837 = vmatpush1.bf16.msra.mxu1 %v2831_v57  ;;  %v2918_v56 = vld [vmem:[#allocation5 + $0x560] ss:$16 sps:$4 sm:$0xff]   ;;  %v2921_v57 = vld [vmem:[#allocation5 + $0x568] ss:$16 sps:$4 sm:$0xff]  }
  0xaa   :  { %1674 = vmatprep.subr.bf16.mxu0 %v2836_v58  ;;  %1838 = vmatprep.subr.bf16.mxu1 %v2839_v59  ;;  %v2926_v58 = vld [vmem:[#allocation5 + $0x584] ss:$16 sps:$4 sm:$0xff]   ;;  %v2929_v59 = vld [vmem:[#allocation5 + $0x58c] ss:$16 sps:$4 sm:$0xff]  }
  0xad   :  { %1675 = vmatpush1.bf16.msra.mxu0 %v2834_v60  ;;  %1839 = vmatpush1.bf16.msra.mxu1 %v2837_v61  ;;  %v2924_v60 = vld [vmem:[#allocation5 + $0x580] ss:$16 sps:$4 sm:$0xff]   ;;  %v2927_v61 = vld [vmem:[#allocation5 + $0x588] ss:$16 sps:$4 sm:$0xff]  }
  0xae   :  { %1676 = vmatprep.subr.bf16.mxu0 %v2842_v62  ;;  %1840 = vmatprep.subr.bf16.mxu1 %v2845_v63  ;;  %v2932_v62 = vld [vmem:[#allocation5 + $0x5a4] ss:$16 sps:$4 sm:$0xff]   ;;  %v2935_v63 = vld [vmem:[#allocation5 + $0x5ac] ss:$16 sps:$4 sm:$0xff]  }
  0xb1   :  { %1677 = vmatpush1.bf16.msra.mxu0 %v2840_v0  ;;  %1841 = vmatpush1.bf16.msra.mxu1 %v2843_v1  ;;  %v2930_v0 = vld [vmem:[#allocation5 + $0x5a0] ss:$16 sps:$4 sm:$0xff]   ;;  %v2933_v1 = vld [vmem:[#allocation5 + $0x5a8] ss:$16 sps:$4 sm:$0xff]  }
  0xb2   :  { %1678 = vmatprep.subr.bf16.mxu0 %v2848_v2  ;;  %1842 = vmatprep.subr.bf16.mxu1 %v2851_v3  ;;  %v2938_v2 = vld [vmem:[#allocation5 + $0x5c4] ss:$16 sps:$4 sm:$0xff]   ;;  %v2941_v3 = vld [vmem:[#allocation5 + $0x5cc] ss:$16 sps:$4 sm:$0xff]  }
  0xb5   :  { %1679 = vmatpush1.bf16.msra.mxu0 %v2846_v4  ;;  %1843 = vmatpush1.bf16.msra.mxu1 %v2849_v5  ;;  %v2936_v4 = vld [vmem:[#allocation5 + $0x5c0] ss:$16 sps:$4 sm:$0xff]   ;;  %v2939_v5 = vld [vmem:[#allocation5 + $0x5c8] ss:$16 sps:$4 sm:$0xff]  }
  0xb6   :  { %1689 = vmatprep.subr.bf16.mxu0 %v2854_v6  ;;  %1853 = vmatprep.subr.bf16.mxu1 %v2857_v8  ;;  %v2944_v6 = vld [vmem:[#allocation5 + $0x5e4] ss:$16 sps:$4 sm:$0xff]   ;;  %v2942_v8 = vld [vmem:[#allocation5 + $0x5e0] ss:$16 sps:$4 sm:$0xff]  }
  0xb8   :  { %1681 = vmatmul.mubr.bf16.vlgmr.msra.gmra.mrb[0].mxu0 %v65_v11  ;;  %1845 = vmatmul.mubr.bf16.vlgmr.msra.gmra.mrb[0].mxu1 %v65_v11  ;;  %v59_v11 = vld [vmem:[#allocation2 + $0x20] sm:$0xff] }
  0xb9   :  { %1690 = vmatpush1.bf16.msra.mxu0 %v2852_v9  ;;  %1854 = vmatpush1.bf16.msra.mxu1 %v2855_v10  ;;  %v2945_v9 = vld [vmem:[#allocation5 + $0x5e8] ss:$16 sps:$4 sm:$0xff]   ;;  %v2950_v10 = vld [vmem:[#allocation5 + $0x604] ss:$16 sps:$4 sm:$0xff]  }
  0xba   :  { %1691 = vmatprep.subr.bf16.mxu0 %v2860_v12  ;;  %1855 = vmatprep.subr.bf16.mxu1 %v2863_v13  ;;  %v2953_v12 = vld [vmem:[#allocation5 + $0x60c] ss:$16 sps:$4 sm:$0xff]   ;;  %v2948_v13 = vld [vmem:[#allocation5 + $0x600] ss:$16 sps:$4 sm:$0xff]  }
  0xbb   :  { %1721 = vmatprep.mubr.bf16.mxu0 %v68_v15  ;;  %1885 = vmatprep.mubr.bf16.mxu1 %v68_v15  ;;  %v67_v15 = vpack.c.bf16 %v59_v11, %v59_v11  ;;  %v3043_v11 = vld [vmem:[#allocation5 + $0x7ec] ss:$16 sps:$4 sm:$0xff]  }
  0xbd   :  { %1692 = vmatpush1.bf16.msra.mxu0 %v2858_v16  ;;  %1856 = vmatpush1.bf16.msra.mxu1 %v2861_v17  ;;  %v62_v16 = vld [vmem:[#allocation2 + $0x38] sm:$0xff]  ;;  %v2956_v17 = vld [vmem:[#allocation5 + $0x624] ss:$16 sps:$4 sm:$0xff]  }
  0xbe   :  { %1693 = vmatprep.subr.bf16.mxu0 %v2866_v18  ;;  %1857 = vmatprep.subr.bf16.mxu1 %v2869_v19  ;;  %v2959_v18 = vld [vmem:[#allocation5 + $0x62c] ss:$16 sps:$4 sm:$0xff]   ;;  %v2954_v19 = vld [vmem:[#allocation5 + $0x620] ss:$16 sps:$4 sm:$0xff]  }
  0xc1   :  { %1694 = vmatpush1.bf16.msra.mxu0 %v2864_v20  ;;  %1858 = vmatpush1.bf16.msra.mxu1 %v2867_v21  ;;  %v70_v20 = vpack.c.bf16 %v62_v16, %v62_v16  ;;  %v2957_v21 = vld [vmem:[#allocation5 + $0x628] ss:$16 sps:$4 sm:$0xff]   ;;  %v3045_v16 = vld [vmem:[#allocation7 + $0xc0] sm:$0xff]  }
  0xc2   :  { %1695 = vmatprep.subr.bf16.mxu0 %v2872_v22  ;;  %1859 = vmatprep.subr.bf16.mxu1 %v2875_v23  ;;  %v2962_v22 = vld [vmem:[#allocation5 + $0x644] ss:$16 sps:$4 sm:$0xff]   ;;  %v2965_v23 = vld [vmem:[#allocation5 + $0x64c] ss:$16 sps:$4 sm:$0xff]  }
  0xc5   :  { %1696 = vmatpush1.bf16.msra.mxu0 %v2870_v24  ;;  %1860 = vmatpush1.bf16.msra.mxu1 %v2873_v25  ;;  %v2960_v24 = vld [vmem:[#allocation5 + $0x640] ss:$16 sps:$4 sm:$0xff]   ;;  %v2963_v25 = vld [vmem:[#allocation5 + $0x648] ss:$16 sps:$4 sm:$0xff]  }
  0xc6   :  { %1697 = vmatprep.subr.bf16.mxu0 %v2878_v26  ;;  %1861 = vmatprep.subr.bf16.mxu1 %v2881_v27  ;;  %v2968_v26 = vld [vmem:[#allocation5 + $0x664] ss:$16 sps:$4 sm:$0xff]   ;;  %v2971_v27 = vld [vmem:[#allocation5 + $0x66c] ss:$16 sps:$4 sm:$0xff]  }
  0xc9   :  { %1698 = vmatpush1.bf16.msra.mxu0 %v2876_v28  ;;  %1862 = vmatpush1.bf16.msra.mxu1 %v2879_v29  ;;  %v2966_v28 = vld [vmem:[#allocation5 + $0x660] ss:$16 sps:$4 sm:$0xff]   ;;  %v2969_v29 = vld [vmem:[#allocation5 + $0x668] ss:$16 sps:$4 sm:$0xff]  }
  0xca   :  { %1699 = vmatprep.subr.bf16.mxu0 %v2884_v30  ;;  %1863 = vmatprep.subr.bf16.mxu1 %v2887_v31  ;;  %v2974_v30 = vld [vmem:[#allocation5 + $0x684] ss:$16 sps:$4 sm:$0xff]   ;;  %v2977_v31 = vld [vmem:[#allocation5 + $0x68c] ss:$16 sps:$4 sm:$0xff]  }
  0xcd   :  { %1700 = vmatpush1.bf16.msra.mxu0 %v2882_v32  ;;  %1864 = vmatpush1.bf16.msra.mxu1 %v2885_v33  ;;  %v2972_v32 = vld [vmem:[#allocation5 + $0x680] ss:$16 sps:$4 sm:$0xff]   ;;  %v2975_v33 = vld [vmem:[#allocation5 + $0x688] ss:$16 sps:$4 sm:$0xff]  }
  0xce   :  { %1701 = vmatprep.subr.bf16.mxu0 %v2890_v34  ;;  %1865 = vmatprep.subr.bf16.mxu1 %v2893_v35  ;;  %v2980_v34 = vld [vmem:[#allocation5 + $0x6a4] ss:$16 sps:$4 sm:$0xff]   ;;  %v2983_v35 = vld [vmem:[#allocation5 + $0x6ac] ss:$16 sps:$4 sm:$0xff]  }
  0xd1   :  { %1702 = vmatpush1.bf16.msra.mxu0 %v2888_v36  ;;  %1866 = vmatpush1.bf16.msra.mxu1 %v2891_v37  ;;  %v2978_v36 = vld [vmem:[#allocation5 + $0x6a0] ss:$16 sps:$4 sm:$0xff]   ;;  %v2981_v37 = vld [vmem:[#allocation5 + $0x6a8] ss:$16 sps:$4 sm:$0xff]  }
  0xd2   :  { %1703 = vmatprep.subr.bf16.mxu0 %v2896_v38  ;;  %1867 = vmatprep.subr.bf16.mxu1 %v2899_v39  ;;  %v2986_v38 = vld [vmem:[#allocation5 + $0x6c4] ss:$16 sps:$4 sm:$0xff]   ;;  %v2989_v39 = vld [vmem:[#allocation5 + $0x6cc] ss:$16 sps:$4 sm:$0xff]  }
  0xd5   :  { %1704 = vmatpush1.bf16.msra.mxu0 %v2894_v40  ;;  %1868 = vmatpush1.bf16.msra.mxu1 %v2897_v41  ;;  %v2984_v40 = vld [vmem:[#allocation5 + $0x6c0] ss:$16 sps:$4 sm:$0xff]   ;;  %v2987_v41 = vld [vmem:[#allocation5 + $0x6c8] ss:$16 sps:$4 sm:$0xff]  }
  0xd6   :  { %1705 = vmatprep.subr.bf16.mxu0 %v2902_v42  ;;  %1869 = vmatprep.subr.bf16.mxu1 %v2905_v43  ;;  %v2992_v42 = vld [vmem:[#allocation5 + $0x6e4] ss:$16 sps:$4 sm:$0xff]   ;;  %v2995_v43 = vld [vmem:[#allocation5 + $0x6ec] ss:$16 sps:$4 sm:$0xff]  }
  0xd9   :  { %1706 = vmatpush1.bf16.msra.mxu0 %v2900_v44  ;;  %1870 = vmatpush1.bf16.msra.mxu1 %v2903_v45  ;;  %v2990_v44 = vld [vmem:[#allocation5 + $0x6e0] ss:$16 sps:$4 sm:$0xff]   ;;  %v2993_v45 = vld [vmem:[#allocation5 + $0x6e8] ss:$16 sps:$4 sm:$0xff]  }
  0xda   :  { %1707 = vmatprep.subr.bf16.mxu0 %v2908_v46  ;;  %1871 = vmatprep.subr.bf16.mxu1 %v2911_v47  ;;  %v2998_v46 = vld [vmem:[#allocation5 + $0x704] ss:$16 sps:$4 sm:$0xff]   ;;  %v3001_v47 = vld [vmem:[#allocation5 + $0x70c] ss:$16 sps:$4 sm:$0xff]  }
  0xdd   :  { %1708 = vmatpush1.bf16.msra.mxu0 %v2906_v48  ;;  %1872 = vmatpush1.bf16.msra.mxu1 %v2909_v49  ;;  %v2996_v48 = vld [vmem:[#allocation5 + $0x700] ss:$16 sps:$4 sm:$0xff]   ;;  %v2999_v49 = vld [vmem:[#allocation5 + $0x708] ss:$16 sps:$4 sm:$0xff]  }
  0xde   :  { %1709 = vmatprep.subr.bf16.mxu0 %v2914_v50  ;;  %1873 = vmatprep.subr.bf16.mxu1 %v2917_v51  ;;  %v3004_v50 = vld [vmem:[#allocation5 + $0x724] ss:$16 sps:$4 sm:$0xff]   ;;  %v3007_v51 = vld [vmem:[#allocation5 + $0x72c] ss:$16 sps:$4 sm:$0xff]  }
  0xe1   :  { %1710 = vmatpush1.bf16.msra.mxu0 %v2912_v52  ;;  %1874 = vmatpush1.bf16.msra.mxu1 %v2915_v53  ;;  %v3002_v52 = vld [vmem:[#allocation5 + $0x720] ss:$16 sps:$4 sm:$0xff]   ;;  %v3005_v53 = vld [vmem:[#allocation5 + $0x728] ss:$16 sps:$4 sm:$0xff]  }
  0xe2   :  { %1711 = vmatprep.subr.bf16.mxu0 %v2920_v54  ;;  %1875 = vmatprep.subr.bf16.mxu1 %v2923_v55  ;;  %v3010_v54 = vld [vmem:[#allocation5 + $0x744] ss:$16 sps:$4 sm:$0xff]   ;;  %v3013_v55 = vld [vmem:[#allocation5 + $0x74c] ss:$16 sps:$4 sm:$0xff]  }
  0xe5   :  { %1712 = vmatpush1.bf16.msra.mxu0 %v2918_v56  ;;  %1876 = vmatpush1.bf16.msra.mxu1 %v2921_v57  ;;  %v3008_v56 = vld [vmem:[#allocation5 + $0x740] ss:$16 sps:$4 sm:$0xff]   ;;  %v3011_v57 = vld [vmem:[#allocation5 + $0x748] ss:$16 sps:$4 sm:$0xff]  }
  0xe6   :  { %1713 = vmatprep.subr.bf16.mxu0 %v2926_v58  ;;  %1877 = vmatprep.subr.bf16.mxu1 %v2929_v59  ;;  %v3016_v58 = vld [vmem:[#allocation5 + $0x764] ss:$16 sps:$4 sm:$0xff]   ;;  %v3019_v59 = vld [vmem:[#allocation5 + $0x76c] ss:$16 sps:$4 sm:$0xff]  }
  0xe9   :  { %1714 = vmatpush1.bf16.msra.mxu0 %v2924_v60  ;;  %1878 = vmatpush1.bf16.msra.mxu1 %v2927_v61  ;;  %v3014_v60 = vld [vmem:[#allocation5 + $0x760] ss:$16 sps:$4 sm:$0xff]   ;;  %v3017_v61 = vld [vmem:[#allocation5 + $0x768] ss:$16 sps:$4 sm:$0xff]  }
  0xea   :  { %1715 = vmatprep.subr.bf16.mxu0 %v2932_v62  ;;  %1879 = vmatprep.subr.bf16.mxu1 %v2935_v63  ;;  %v3022_v62 = vld [vmem:[#allocation5 + $0x784] ss:$16 sps:$4 sm:$0xff]   ;;  %v3025_v63 = vld [vmem:[#allocation5 + $0x78c] ss:$16 sps:$4 sm:$0xff]  }
  0xed   :  { %1716 = vmatpush1.bf16.msra.mxu0 %v2930_v0  ;;  %1880 = vmatpush1.bf16.msra.mxu1 %v2933_v1  ;;  %v3020_v0 = vld [vmem:[#allocation5 + $0x780] ss:$16 sps:$4 sm:$0xff]   ;;  %v3023_v1 = vld [vmem:[#allocation5 + $0x788] ss:$16 sps:$4 sm:$0xff]  }
  0xee   :  { %1717 = vmatprep.subr.bf16.mxu0 %v2938_v2  ;;  %1881 = vmatprep.subr.bf16.mxu1 %v2941_v3  ;;  %v3028_v2 = vld [vmem:[#allocation5 + $0x7a4] ss:$16 sps:$4 sm:$0xff]   ;;  %v3031_v3 = vld [vmem:[#allocation5 + $0x7ac] ss:$16 sps:$4 sm:$0xff]  }
  0xf1   :  { %1718 = vmatpush1.bf16.msra.mxu0 %v2936_v4  ;;  %1882 = vmatpush1.bf16.msra.mxu1 %v2939_v5  ;;  %v3026_v4 = vld [vmem:[#allocation5 + $0x7a0] ss:$16 sps:$4 sm:$0xff]   ;;  %v3029_v5 = vld [vmem:[#allocation5 + $0x7a8] ss:$16 sps:$4 sm:$0xff]  }
  0xf2   :  { %1719 = vmatprep.subr.bf16.mxu0 %v2944_v6  ;;  %1883 = vmatprep.subr.bf16.mxu1 %v2947_v7  ;;  %v3034_v6 = vld [vmem:[#allocation5 + $0x7c4] ss:$16 sps:$4 sm:$0xff]   ;;  %v3037_v7 = vld [vmem:[#allocation5 + $0x7cc] ss:$16 sps:$4 sm:$0xff]  }
  0xf5   :  { %1720 = vmatpush1.bf16.msra.mxu0 %v2942_v8  ;;  %1884 = vmatpush1.bf16.msra.mxu1 %v2945_v9  ;;  %v3032_v8 = vld [vmem:[#allocation5 + $0x7c0] ss:$16 sps:$4 sm:$0xff]   ;;  %v3035_v9 = vld [vmem:[#allocation5 + $0x7c8] ss:$16 sps:$4 sm:$0xff]  }
  0xf6   :  { %1730 = vmatprep.subr.bf16.mxu0 %v2950_v10  ;;  %1894 = vmatprep.subr.bf16.mxu1 %v2953_v12  ;;  %v3040_v10 = vld [vmem:[#allocation5 + $0x7e4] ss:$16 sps:$4 sm:$0xff]   ;;  %v3038_v12 = vld [vmem:[#allocation5 + $0x7e0] ss:$16 sps:$4 sm:$0xff]  }
  0xf8   :  { %1722 = vmatmul.mubr.bf16.vlgmr.msra.gmra.mrb[0].mxu0 %v67_v15  ;;  %1886 = vmatmul.mubr.bf16.vlgmr.msra.gmra.mrb[0].mxu1 %v67_v15  ;;  %v3044_v15 = vld [vmem:[#allocation7 + $0x40] sm:$0xff]  }
  0xf9   :  { %1731 = vmatpush1.bf16.msra.mxu0 %v2948_v13  ;;  %1895 = vmatpush1.bf16.msra.mxu1 %v2951_v14  ;;  %v3041_v13 = vld [vmem:[#allocation5 + $0x7e8] ss:$16 sps:$4 sm:$0xff]   ;;  %v61_v14 = vld [vmem:[#allocation2 + $0x30] sm:$0xff] }
  0xfa   :  { %1732 = vmatprep.subr.bf16.mxu0 %v2956_v17  ;;  %1896 = vmatprep.subr.bf16.mxu1 %v2959_v18  ;;  %v69_v17 = vpack.c.bf16 %v61_v14, %v61_v14  ;;  %v3046_v18 = vld [vmem:[#allocation7] sm:$0xff]  }
  0xfb   :  { %1762 = vmatprep.mubr.bf16.mxu0 %v70_v20  ;;  %1926 = vmatprep.mubr.bf16.mxu1 %v70_v20  ;;  %v3048_v20 = vld [vmem:[#allocation7 + $0x48] sm:$0xff]  }
  0xfd   :  { %1733 = vmatpush1.bf16.msra.mxu0 %v2954_v19  ;;  %1897 = vmatpush1.bf16.msra.mxu1 %v2957_v21  ;;  %v3047_v19 = vld [vmem:[#allocation7 + $0x80] sm:$0xff]   ;;  %v3049_v21 = vld [vmem:[#allocation7 + $0xc8] sm:$0xff]  }
  0xfe   :  { %1734 = vmatprep.subr.bf16.mxu0 %v2962_v22  ;;  %1898 = vmatprep.subr.bf16.mxu1 %v2965_v23  ;;  %v3050_v22 = vld [vmem:[#allocation7 + $0x8] sm:$0xff]  }
  0xff   :  { %v3051_v23 = vld [vmem:[#allocation7 + $0x88] sm:$0xff]  }
 0x101   :  { %1735 = vmatpush1.bf16.msra.mxu0 %v2960_v24  ;;  %1899 = vmatpush1.bf16.msra.mxu1 %v2963_v25  ;;  %v3052_v24 = vld [vmem:[#allocation7 + $0x50] sm:$0xff]  }
 0x102   :  { %1736 = vmatprep.subr.bf16.mxu0 %v2968_v26  ;;  %1900 = vmatprep.subr.bf16.mxu1 %v2971_v27  ;;  %v3053_v25 = vld [vmem:[#allocation7 + $0xd0] sm:$0xff]  }
 0x103   :  { %v3054_v26 = vld [vmem:[#allocation7 + $0x10] sm:$0xff]  }
 0x104   :  { %v3055_v27 = vld [vmem:[#allocation7 + $0x90] sm:$0xff]  }
 0x105   :  { %1737 = vmatpush1.bf16.msra.mxu0 %v2966_v28  ;;  %1901 = vmatpush1.bf16.msra.mxu1 %v2969_v29  ;;  %v3056_v28 = vld [vmem:[#allocation7 + $0x58] sm:$0xff]  }
 0x106   :  { %1738 = vmatprep.subr.bf16.mxu0 %v2974_v30  ;;  %1902 = vmatprep.subr.bf16.mxu1 %v2977_v31  ;;  %v3057_v29 = vld [vmem:[#allocation7 + $0xd8] sm:$0xff]  }
 0x107   :  { %v3058_v30 = vld [vmem:[#allocation7 + $0x18] sm:$0xff]  }
 0x108   :  { %v3059_v31 = vld [vmem:[#allocation7 + $0x98] sm:$0xff]  }
 0x109   :  { %1739 = vmatpush1.bf16.msra.mxu0 %v2972_v32  ;;  %1903 = vmatpush1.bf16.msra.mxu1 %v2975_v33  ;;  %v3060_v32 = vld [vmem:[#allocation7 + $0x60] sm:$0xff]  }
 0x10a   :  { %1740 = vmatprep.subr.bf16.mxu0 %v2980_v34  ;;  %1904 = vmatprep.subr.bf16.mxu1 %v2983_v35  ;;  %v3061_v33 = vld [vmem:[#allocation7 + $0xe0] sm:$0xff]  }
 0x10b   :  { %v3062_v34 = vld [vmem:[#allocation7 + $0x20] sm:$0xff]  }
 0x10c   :  { %v3063_v35 = vld [vmem:[#allocation7 + $0xa0] sm:$0xff]  }
 0x10d   :  { %1741 = vmatpush1.bf16.msra.mxu0 %v2978_v36  ;;  %1905 = vmatpush1.bf16.msra.mxu1 %v2981_v37  ;;  %v3064_v36 = vld [vmem:[#allocation7 + $0x68] sm:$0xff]  }
 0x10e   :  { %1742 = vmatprep.subr.bf16.mxu0 %v2986_v38  ;;  %1906 = vmatprep.subr.bf16.mxu1 %v2989_v39  ;;  %v3065_v37 = vld [vmem:[#allocation7 + $0xe8] sm:$0xff]  }
 0x10f   :  { %v3066_v38 = vld [vmem:[#allocation7 + $0x28] sm:$0xff]  }
 0x110   :  { %v3067_v39 = vld [vmem:[#allocation7 + $0xa8] sm:$0xff]  }
 0x111   :  { %1743 = vmatpush1.bf16.msra.mxu0 %v2984_v40  ;;  %1907 = vmatpush1.bf16.msra.mxu1 %v2987_v41  ;;  %v3068_v40 = vld [vmem:[#allocation7 + $0x70] sm:$0xff]  }
 0x112   :  { %1744 = vmatprep.subr.bf16.mxu0 %v2992_v42  ;;  %1908 = vmatprep.subr.bf16.mxu1 %v2995_v43  ;;  %v3069_v41 = vld [vmem:[#allocation7 + $0xf0] sm:$0xff]  }
 0x113   :  { %v3070_v42 = vld [vmem:[#allocation7 + $0x30] sm:$0xff]  }
 0x114   :  { %v3071_v43 = vld [vmem:[#allocation7 + $0xb0] sm:$0xff]  }
 0x115   :  { %1745 = vmatpush1.bf16.msra.mxu0 %v2990_v44  ;;  %1909 = vmatpush1.bf16.msra.mxu1 %v2993_v45  ;;  %v3072_v44 = vld [vmem:[#allocation7 + $0x78] sm:$0xff]  }
 0x116   :  { %1746 = vmatprep.subr.bf16.mxu0 %v2998_v46  ;;  %1910 = vmatprep.subr.bf16.mxu1 %v3001_v47  ;;  %v3073_v45 = vld [vmem:[#allocation7 + $0xf8] sm:$0xff]  }
 0x117   :  { %v3074_v46 = vld [vmem:[#allocation7 + $0x38] sm:$0xff]  }
 0x118   :  { %v3075_v47 = vld [vmem:[#allocation7 + $0xb8] sm:$0xff]  }
 0x119   :  { %1747 = vmatpush1.bf16.msra.mxu0 %v2996_v48  ;;  %1911 = vmatpush1.bf16.msra.mxu1 %v2999_v49 }
 0x11a   :  { %1748 = vmatprep.subr.bf16.mxu0 %v3004_v50  ;;  %1912 = vmatprep.subr.bf16.mxu1 %v3007_v51 }
 0x11d   :  { %1749 = vmatpush1.bf16.msra.mxu0 %v3002_v52  ;;  %1913 = vmatpush1.bf16.msra.mxu1 %v3005_v53 }
 0x11e   :  { %1750 = vmatprep.subr.bf16.mxu0 %v3010_v54  ;;  %1914 = vmatprep.subr.bf16.mxu1 %v3013_v55 }
 0x121   :  { %1751 = vmatpush1.bf16.msra.mxu0 %v3008_v56  ;;  %1915 = vmatpush1.bf16.msra.mxu1 %v3011_v57 }
 0x122   :  { %1752 = vmatprep.subr.bf16.mxu0 %v3016_v58  ;;  %1916 = vmatprep.subr.bf16.mxu1 %v3019_v59 }
 0x125   :  { %1753 = vmatpush1.bf16.msra.mxu0 %v3014_v60  ;;  %1917 = vmatpush1.bf16.msra.mxu1 %v3017_v61 }
 0x126   :  { %1754 = vmatprep.subr.bf16.mxu0 %v3022_v62  ;;  %1918 = vmatprep.subr.bf16.mxu1 %v3025_v63 }
 0x129   :  { %1755 = vmatpush1.bf16.msra.mxu0 %v3020_v0  ;;  %1919 = vmatpush1.bf16.msra.mxu1 %v3023_v1 }
 0x12a   :  { %1756 = vmatprep.subr.bf16.mxu0 %v3028_v2  ;;  %1920 = vmatprep.subr.bf16.mxu1 %v3031_v3 }
 0x12d   :  { %1757 = vmatpush1.bf16.msra.mxu0 %v3026_v4  ;;  %1921 = vmatpush1.bf16.msra.mxu1 %v3029_v5 }
 0x12e   :  { %1758 = vmatprep.subr.bf16.mxu0 %v3034_v6  ;;  %1922 = vmatprep.subr.bf16.mxu1 %v3037_v7 }
 0x131   :  { %1759 = vmatpush1.bf16.msra.mxu0 %v3032_v8  ;;  %1923 = vmatpush1.bf16.msra.mxu1 %v3035_v9 }
 0x132   :  { %1760 = vmatprep.subr.bf16.mxu0 %v3040_v10  ;;  %1924 = vmatprep.subr.bf16.mxu1 %v3043_v11 }
 0x135   :  { %1761 = vmatpush1.bf16.msra.mxu0 %v3038_v12  ;;  %1925 = vmatpush1.bf16.msra.mxu1 %v3041_v13 }
 0x136   :  { %2584 = vmatprep.subr.bf16.mxu0 %v3044_v15  ;;  %2606 = vmatprep.subr.bf16.mxu1 %v3045_v16 }
 0x138   :  { %1763 = vmatmul.mubr.bf16.vlgmr.msra.gmra.mrb[0].mxu0 %v69_v17  ;;  %1927 = vmatmul.mubr.bf16.vlgmr.msra.gmra.mrb[0].mxu1 %v69_v17 }
 0x139   :  { %2585 = vmatpush3.bf16.msra.mxu0 %v3046_v18  ;;  %2607 = vmatpush3.bf16.msra.mxu1 %v3047_v19 }
 0x13a   :  { %2586 = vmatprep.subr.bf16.mxu0 %v3048_v20  ;;  %2608 = vmatprep.subr.bf16.mxu1 %v3049_v21 }
 0x13d   :  { %2587 = vmatpush3.bf16.msra.mxu0 %v3050_v22  ;;  %2609 = vmatpush3.bf16.msra.mxu1 %v3051_v23 }
 0x13e   :  { %2588 = vmatprep.subr.bf16.mxu0 %v3052_v24  ;;  %2610 = vmatprep.subr.bf16.mxu1 %v3053_v25 }
 0x141   :  { %2589 = vmatpush3.bf16.msra.mxu0 %v3054_v26  ;;  %2611 = vmatpush3.bf16.msra.mxu1 %v3055_v27 }
 0x142   :  { %2590 = vmatprep.subr.bf16.mxu0 %v3056_v28  ;;  %2612 = vmatprep.subr.bf16.mxu1 %v3057_v29 }
 0x145   :  { %2591 = vmatpush3.bf16.msra.mxu0 %v3058_v30  ;;  %2613 = vmatpush3.bf16.msra.mxu1 %v3059_v31 }
 0x146   :  { %2592 = vmatprep.subr.bf16.mxu0 %v3060_v32  ;;  %2614 = vmatprep.subr.bf16.mxu1 %v3061_v33 }
 0x149   :  { %2593 = vmatpush3.bf16.msra.mxu0 %v3062_v34  ;;  %2615 = vmatpush3.bf16.msra.mxu1 %v3063_v35 }
 0x14a   :  { %2594 = vmatprep.subr.bf16.mxu0 %v3064_v36  ;;  %2616 = vmatprep.subr.bf16.mxu1 %v3065_v37 }
 0x14d   :  { %2595 = vmatpush3.bf16.msra.mxu0 %v3066_v38  ;;  %2617 = vmatpush3.bf16.msra.mxu1 %v3067_v39 }
 0x14e   :  { %2596 = vmatprep.subr.bf16.mxu0 %v3068_v40  ;;  %2618 = vmatprep.subr.bf16.mxu1 %v3069_v41 }
 0x151   :  { %2597 = vmatpush3.bf16.msra.mxu0 %v3070_v42  ;;  %2619 = vmatpush3.bf16.msra.mxu1 %v3071_v43 }
 0x152   :  { %2598 = vmatprep.subr.bf16.mxu0 %v3072_v44  ;;  %2620 = vmatprep.subr.bf16.mxu1 %v3073_v45 }
 0x155   :  { %2599 = vmatpush3.bf16.msra.mxu0 %v3074_v46  ;;  %2621 = vmatpush3.bf16.msra.mxu1 %v3075_v47 }
 0x20b   :  { %v1764_v48 = vpop.f32.mrb[0].mxu0  ;;  %v1928_v49 = vpop.f32.mrb[0].mxu1 }
 0x20c   :  { %v1935_v50 = vmax.f32 %v1764_v48, 0.0  ;;  %v1937_v51 = vmax.f32 %v1928_v49, 0.0  ;;  %v1766_v52 = vpop.f32.mrb[1].mxu0  ;;  %v1930_v53 = vpop.f32.mrb[1].mxu1 }
 0x20d   :  { %v1936_v54 = vmax.f32 %v1766_v52, 0.0  ;;  %v1938_v55 = vmax.f32 %v1930_v53, 0.0  ;;  %v1768_v56 = vpop.f32.mrb[2].mxu0  ;;  %v1932_v57 = vpop.f32.mrb[2].mxu1 }
 0x20e   :  { %v1769_v58 = vpop.f32.mrb[3].mxu0  ;;  %v1933_v59 = vpop.f32.mrb[3].mxu1  ;;  %v1939_v62 = vpack.c.bf16 %v1935_v50, %v1935_v50  ;;  %v1941_v63 = vpack.c.bf16 %v1937_v51, %v1937_v51 }
 0x20f   :  { %v1940_v60 = vpack.c.bf16 %v1936_v54, %v1936_v54  ;;  %v1942_v61 = vpack.c.bf16 %v1938_v55, %v1938_v55 }
 0x211   :  { %2231 = vmatprep.mubr.bf16.mxu0 %v1940_v60  ;;  %2271 = vmatprep.mubr.bf16.mxu1 %v1942_v61 }
 0x212   :  { %2232 = vmatmul.mubr.bf16.vlgmr.msra.gmra.mrb[4].mxu0 %v1939_v62  ;;  %2272 = vmatmul.mubr.bf16.vlgmr.msra.gmra.mrb[4].mxu1 %v1941_v63 }
 0x2e5   :  { %v2600_v0 = vpop.f32.mrb[4].mxu0  ;;  %v2622_v1 = vpop.f32.mrb[4].mxu1 }
 0x2e6   :  { %v2601_v2 = vpop.f32.mrb[5].mxu0  ;;  %v2623_v3 = vpop.f32.mrb[5].mxu1 }
 0x2e7   :  { %v2602_v4 = vadd.f32 %v2601_v2, %v2600_v0  ;;  %v2624_v5 = vadd.f32 %v2623_v3, %v2622_v1  ;;  %v2603_v6 = vpop.f32.mrb[6].mxu0  ;;  %v2625_v7 = vpop.f32.mrb[6].mxu1 }
 0x2e8   :  { %v2604_v8 = vpop.f32.mrb[7].mxu0  ;;  %v2626_v9 = vpop.f32.mrb[7].mxu1 }
 0x2e9   :  { %v2274_v10 = vadd.f32 %v2624_v5, %v2602_v4 }
 0x2eb   :  { %2279 = vst [vmem:[#allocation8] sm:$0xff] %v2274_v10 }
 0x2ec   :  { %3153 = shalt.err (!%p3150_p0)
}
 0x2ed   :  { %s3154_s27 = scalar_lea.hbm %s3249_s3, 128 }
 0x2ee   :  { %p3155_p1 = scmp.ne.s32.totalorder %s3249_s3, %s3154_s27  ;;  %p3158_p2 = scmp.lt.u32.totalorder %s3154_s27, %s3249_s3 }
 0x2f0   :  { %p3160_p3 = pnand %p3158_p2, %p3155_p1 }
 0x2f2   :  { %3163 = shalt.err (!%p3160_p3)
}
 0x2f3   :  { %2289 = dma.vmem_to_hbm [thread:$0]  %s2287_s23, 128, %s3249_s3, [#allocation4]  }
 0x2f4   :  { %3168 = dma.done.wait [#allocation4], 128  }
 0x2f5   :  { %3169 = vsyncadd [#allocation4], 4294967168 }
 0x2f6   :  { %2293 = vsyncpa [#allocation3], 1 }
 0x2f7   :  { %2294 = vsyncpa [#allocation6], 1 }
 0x2f8   :  { %2295 = vsyncpa [#allocation4], 1 }

</bundles_post_ra>
